<compile_context>
chip_gen: v7x
topology: tpu7x:2x2x1
jax: 0.10.0
libtpu: 0.0.40
codegen_flags: <defaults>
</compile_context>

<pallas_src>
import functools

import jax
import jax.numpy as jnp
import numpy as np
from jax import lax
from jax.experimental import pallas as pl
from jax.experimental.pallas import tpu as pltpu


def _ngram_kernel(ngram, shift_step, block_q, block_k, fuse_proj, d_model,
                  row_ids_ref, col_ids_ref, xk_ref, xq_ref, w_ref, b_ref,
                  y_ref, acc_ref, den_ref):
    """Grid = (B, S // block_q, S // block_k); one (q-block, k-block) tile."""
    ki = pl.program_id(2)
    nk = pl.num_programs(2)

    @pl.when(ki == 0)
    def _init():
        acc_ref[...] = jnp.zeros_like(acc_ref)
        den_ref[...] = jnp.zeros_like(den_ref)

    q0 = pl.program_id(1) * block_q
    k0 = ki * block_k

    row_ids = row_ids_ref[0]                  # (block_q, ngram): ids[q0+i-t]
    col_ids = col_ids_ref[0]                  # (ngram, block_k): ids[k0+j-shift-t]

    # Fused induction-head mask: causal & boundary & all n-gram id equalities.
    # (Wrapped jnp.roll values only land on entries killed by the boundary.)
    row_g = q0 + lax.broadcasted_iota(jnp.int32, (block_q, block_k), 0)
    col_g = k0 + lax.broadcasted_iota(jnp.int32, (block_q, block_k), 1)
    cond = jnp.logical_and(col_g < row_g, col_g >= shift_step + ngram - 1)
    for t in range(ngram):
        r = row_ids[:, t:t + 1]               # (block_q, 1)
        c = col_ids[t:t + 1, :]               # (1, block_k)
        cond = jnp.logical_and(cond, r == c)

    ihf = cond.astype(jnp.float32)            # exact 0/1
    den_ref[...] += jnp.sum(ihf, axis=1, keepdims=True)
    # mask @ x on the MXU in bf16 (0/1 lhs is exact), f32 accumulation.
    acc_ref[...] += jnp.dot(ihf.astype(jnp.bfloat16), xk_ref[0],
                            preferred_element_type=jnp.float32)

    @pl.when(ki == nk - 1)
    def _finalize():
        # Exact normalization of the (block_q, D) numerator (counts are exact
        # f32 integers; rows with count 0 have a zero numerator -> stay 0,
        # matching torch.nan_to_num).
        inv = 1.0 / jnp.maximum(den_ref[...], 1.0)        # (block_q, 1)
        h0 = (acc_ref[...] * inv).astype(jnp.bfloat16)    # (block_q, D)
        xq = xq_ref[0]                                    # (block_q, D) bf16
        if fuse_proj:
            hx = jnp.concatenate([h0, xq], axis=-1)       # (block_q, 2D)
            y = jnp.dot(hx, w_ref[...], preferred_element_type=jnp.float32)
        else:
            y = (jnp.dot(h0, w_ref[0:d_model, :],
                         preferred_element_type=jnp.float32)
                 + jnp.dot(xq, w_ref[d_model:2 * d_model, :],
                           preferred_element_type=jnp.float32))
        y_ref[0] = (y + b_ref[...]).astype(y_ref.dtype)


def _round_up(x, m):
    return ((x + m - 1) // m) * m


def _vmem_capacity_bytes():
    try:
        return int(pltpu.get_tpu_info().vmem_capacity_bytes)
    except Exception:
        return 64 * 1024 * 1024           # conservative (v7x per-TensorCore)


def _pick_block(S, cap, unit):
    if S <= cap:
        return S
    b = (cap // unit) * unit
    while b >= unit and S % b != 0:
        b -= unit
    return b if b >= unit else S


def _vmem_limit_bytes(block_q, block_k, D, ngram, out_bytes, vmem_cap):
    Dp = _round_up(D, 128)
    bq = _round_up(block_q, 8)
    bk8 = _round_up(block_k, 8)
    bk128 = _round_up(block_k, 128)
    dbl = 2                                   # double-buffered pipeline stages
    est = 0
    est += dbl * bk8 * Dp * 2                 # x key blocks (bf16)
    est += dbl * bq * Dp * 2                  # x query block (bf16)
    est += dbl * bq * 128 * 4                 # row_ids (ngram lanes pad to 128)
    est += dbl * 8 * bk128 * 4                # col_ids (ngram sublanes pad to 8)
    est += dbl * _round_up(2 * D, 16) * Dp * 2  # stacked weights (bf16)
    est += dbl * 8 * Dp * 4                   # bias
    est += dbl * bq * Dp * out_bytes          # output block
    est += bq * Dp * 4 + bq * 128 * 4         # f32 scratch accumulators
    est += bq * bk128 * 16 + bq * Dp * 16     # in-kernel temporaries (generous)
    lim = max(2 * est, 32 * 1024 * 1024)
    return int(min(lim, (vmem_cap * 9) // 10))


def ngram_forward(x, input_ids, w0, b0, w1, b1, *, ngram=1, shift_step=1,
                  block_q=None, block_k=None):
    """Pallas implementation of Ngram.forward(x, input_ids)."""
    B, S, D = x.shape
    ids = input_ids.astype(jnp.int32)

    vmem_cap = _vmem_capacity_bytes()
    big_vmem = vmem_cap >= 96 * 1024 * 1024   # v5e/v6e (128 MiB) vs v7x (64 MiB)
    if block_q is None:
        block_q = _pick_block(S, 512 if big_vmem else 256, 8)
        # Keep both v7x TensorCores fed when B == 1 and the whole sequence
        # would otherwise be a single q-block.
        if B == 1 and block_q == S and S >= 16 and (S // 2) % 8 == 0:
            block_q = S // 2
    if block_k is None:
        block_k = _pick_block(S, 1024 if big_vmem else 512, 128)

    assert S % block_q == 0 and (block_q == S or block_q % 8 == 0), \
        "block_q must divide S and be a multiple of 8 (or equal S)"
    assert S % block_k == 0 and (block_k == S or block_k % 128 == 0), \
        "block_k must divide S and be a multiple of 128 (or equal S)"

    # Shifted id vectors (tiny):
    #   row_ids[b, p, t] = ids[b, p - t]            (query side, sublane-major)
    #   col_ids[b, t, p] = ids[b, p - shift - t]    (key side, lane-dense)
    row_ids = jnp.stack([jnp.roll(ids, t, axis=1) for t in range(ngram)],
                        axis=-1)
    col_ids = jnp.stack([jnp.roll(ids, shift_step + t, axis=1)
                         for t in range(ngram)], axis=1)

    x_bf = x.astype(jnp.bfloat16)
    w_cat = jnp.concatenate([w0, w1], axis=0).astype(jnp.bfloat16)   # (2D, D)
    b_sum = (b0 + b1).reshape(1, D).astype(jnp.float32)

    fuse_proj = (D % 128 == 0)
    num_q = S // block_q
    num_k = S // block_k
    out_dtype = x.dtype
    out_bytes = jnp.dtype(out_dtype).itemsize

    kernel = functools.partial(_ngram_kernel, ngram, shift_step, block_q,
                               block_k, fuse_proj, D)

    cost = pl.CostEstimate(
        flops=int(2 * B * S * S * D + 2 * B * S * (2 * D) * D),
        transcendentals=0,
        bytes_accessed=int(
            (row_ids.size + col_ids.size) * 4        # id tables
            + B * S * D * 2 * (num_q + 1)            # x keys (re-read per q-block) + queries
            + 2 * D * D * 2 + D * 4                  # weights + bias
            + B * S * D * out_bytes),                # output
    )

    return pl.pallas_call(
        kernel,
        out_shape=jax.ShapeDtypeStruct((B, S, D), out_dtype),
        grid=(B, num_q, num_k),
        in_specs=[
            pl.BlockSpec((1, block_q, ngram), lambda bi, qi, ki: (bi, qi, 0)),
            pl.BlockSpec((1, ngram, block_k), lambda bi, qi, ki: (bi, 0, ki)),
            pl.BlockSpec((1, block_k, D), lambda bi, qi, ki: (bi, ki, 0)),   # x keys
            pl.BlockSpec((1, block_q, D), lambda bi, qi, ki: (bi, qi, 0)),   # x queries
            pl.BlockSpec((2 * D, D), lambda bi, qi, ki: (0, 0)),             # [w0; w1]
            pl.BlockSpec((1, D), lambda bi, qi, ki: (0, 0)),                 # b0 + b1
        ],
        out_specs=pl.BlockSpec((1, block_q, D), lambda bi, qi, ki: (bi, qi, 0)),
        scratch_shapes=[
            pltpu.VMEM((block_q, D), jnp.float32),    # numerator accumulator
            pltpu.VMEM((block_q, 1), jnp.float32),    # match-count accumulator
        ],
        compiler_params=pltpu.CompilerParams(
            dimension_semantics=("parallel", "parallel", "arbitrary"),
            vmem_limit_bytes=_vmem_limit_bytes(block_q, block_k, D, ngram,
                                               out_bytes, vmem_cap),
        ),
        cost_estimate=cost,
    )(row_ids, col_ids, x_bf, x_bf, w_cat, b_sum)


# ----- pure-JAX reference (mirrors the PyTorch code) for validation -----
def induction_head_ref(ids, hidden, shift_step=1, ngram=1):
    _, S = ids.shape
    mask0 = ids[:, None, :] == ids[:, :, None]
    causal = jnp.tril(jnp.ones((S, S), dtype=bool), k=-1)
    mask0 = jnp.logical_and(mask0, causal)
    total = mask0.astype(jnp.int32)
    m = mask0
    for _ in range(1, ngram):
        m = jnp.pad(m, ((0, 0), (1, 0), (1, 0)))[:, :S, :S]
        total = total + m.astype(jnp.int32)
    ih = total >= ngram
    if shift_step > 0:
        ih = jnp.pad(ih, ((0, 0), (0, 0), (shift_step, 0)))[:, :, :S]
    ih = jnp.logical_and(ih, causal)
    denom = ih.sum(axis=2, keepdims=True)
    norm = ih.astype(jnp.float32) / jnp.maximum(denom, 1).astype(jnp.float32)
    return jnp.einsum('bmn,bnz->bmz', norm, hidden)


if __name__ == "__main__":
    B, S, D = 2, 256, 32
    NGRAM = 2
    SHIFT = 1          # Ngram.forward uses induction_head's default shift_step=1
    BLOCK_Q = 64       # grid = (B, S // BLOCK_Q, S // BLOCK_K) = (2, 4, 2):
    BLOCK_K = 128      # exercises both the q-tiling and the key-accumulation path

    key = jax.random.PRNGKey(0)
    kx, kid, kw0, kb0, kw1, kb1 = jax.random.split(key, 6)
    x = jax.random.normal(kx, (B, S, D), dtype=jnp.float32)
    input_ids = jax.random.randint(kid, (B, S), 0, 5, dtype=jnp.int32)
    # deterministic synthetic t0 / t1 parameters stored as (D_in, D_out): y = x @ W + b
    w0 = jax.random.normal(kw0, (D, D), dtype=jnp.float32) * 0.05
    b0 = jax.random.normal(kb0, (D,), dtype=jnp.float32) * 0.05
    w1 = jax.random.normal(kw1, (D, D), dtype=jnp.float32) * 0.05
    b1 = jax.random.normal(kb1, (D,), dtype=jnp.float32) * 0.05

    y = ngram_forward(x, input_ids, w0, b0, w1, b1,
                      ngram=NGRAM, shift_step=SHIFT,
                      block_q=BLOCK_Q, block_k=BLOCK_K)
    y = jax.block_until_ready(y)

    h0_ref = induction_head_ref(input_ids, x, shift_step=SHIFT, ngram=NGRAM)
    y_ref = h0_ref @ w0 + b0 + x @ w1 + b1
    np.testing.assert_allclose(np.asarray(y), np.asarray(y_ref),
                               rtol=2e-2, atol=2e-2)

    print("KERNEL_OK")
</pallas_src>

<mosaic_0001>
module attributes {stable_mosaic.version = 11 : i64} {
  func.func @_ngram_kernel(%arg0: i32, %arg1: i32, %arg2: i32, %arg3: memref<1x64x2xi32, #tpu.memory_space<vmem>>, %arg4: memref<1x2x128xi32, #tpu.memory_space<vmem>>, %arg5: memref<1x128x32xbf16, #tpu.memory_space<vmem>>, %arg6: memref<1x64x32xbf16, #tpu.memory_space<vmem>>, %arg7: memref<64x32xbf16, #tpu.memory_space<vmem>>, %arg8: memref<1x32xf32, #tpu.memory_space<vmem>>, %arg9: memref<1x64x32xf32, #tpu.memory_space<vmem>>, %arg10: memref<64x32xf32, #tpu.memory_space<vmem>>, %arg11: memref<64x1xf32, #tpu.memory_space<vmem>>) attributes {dimension_semantics = [#tpu.dimension_semantics<parallel>, #tpu.dimension_semantics<parallel>, #tpu.dimension_semantics<arbitrary>], iteration_bounds = array<i64: 2, 4, 2>, scalar_prefetch = 0 : i64, scratch_operands = 2 : i64, tpu.core_type = #tpu.core_type<tc>, window_params = [{transform_indices = @transform_0, window_bounds = array<i64: 1, 64, 2>}, {transform_indices = @transform_1, window_bounds = array<i64: 1, 2, 128>}, {transform_indices = @transform_2, window_bounds = array<i64: 1, 128, 32>}, {transform_indices = @transform_3, window_bounds = array<i64: 1, 64, 32>}, {pipeline_mode = #tpu.pipeline_mode<synchronous>, transform_indices = @transform_4, window_bounds = array<i64: 64, 32>}, {pipeline_mode = #tpu.pipeline_mode<synchronous>, transform_indices = @transform_5, window_bounds = array<i64: 1, 32>}, {transform_indices = @transform_6, window_bounds = array<i64: 1, 64, 32>}]} {
    %c0_i32 = arith.constant 0 : i32
    %0 = arith.cmpi eq, %arg2, %c0_i32 : i32
    %1 = arith.extui %0 : i1 to i32
    %c0_i32_0 = arith.constant 0 : i32
    %2 = arith.cmpi ne, %1, %c0_i32_0 : i32
    scf.if %2 {
      %cst_19 = arith.constant 0.000000e+00 : f32
      %48 = vector.broadcast %cst_19 : f32 to vector<64x32xf32>
      %c0_20 = arith.constant 0 : index
      %c0_21 = arith.constant 0 : index
      %49 = vector.load %arg10[%c0_20, %c0_21] : memref<64x32xf32, #tpu.memory_space<vmem>>, vector<64x32xf32>
      tpu.vector_store %arg10[%c0_20, %c0_21], %48 {strides = array<i32>} : memref<64x32xf32, #tpu.memory_space<vmem>>, vector<64x32xf32>,
      %cst_22 = arith.constant 0.000000e+00 : f32
      %50 = vector.broadcast %cst_22 : f32 to vector<64x1xf32>
      %c0_23 = arith.constant 0 : index
      %c0_24 = arith.constant 0 : index
      %51 = vector.load %arg11[%c0_23, %c0_24] : memref<64x1xf32, #tpu.memory_space<vmem>>, vector<64x1xf32>
      tpu.vector_store %arg11[%c0_23, %c0_24], %50 {strides = array<i32>} : memref<64x1xf32, #tpu.memory_space<vmem>>, vector<64x1xf32>,
    } else {
    }
    %c64_i32 = arith.constant 64 : i32
    %3 = arith.muli %arg1, %c64_i32 : i32
    %c128_i32 = arith.constant 128 : i32
    %4 = arith.muli %arg2, %c128_i32 : i32
    %c0 = arith.constant 0 : index
    %c0_1 = arith.constant 0 : index
    %c0_2 = arith.constant 0 : index
    %5 = vector.load %arg3[%c0, %c0_1, %c0_2] : memref<1x64x2xi32, #tpu.memory_space<vmem>>, vector<1x64x2xi32>
    %6 = vector.shape_cast %5 : vector<1x64x2xi32> to vector<64x2xi32>
    %c0_3 = arith.constant 0 : index
    %c0_4 = arith.constant 0 : index
    %c0_5 = arith.constant 0 : index
    %7 = vector.load %arg4[%c0_3, %c0_4, %c0_5] : memref<1x2x128xi32, #tpu.memory_space<vmem>>, vector<1x2x128xi32>
    %8 = vector.shape_cast %7 : vector<1x2x128xi32> to vector<2x128xi32>
    %9 = tpu.iota {dimensions = array<i32: 0>} : vector<64x128xi32>
    %10 = vector.broadcast %3 : i32 to vector<64x128xi32>
    %11 = arith.addi %10, %9 : vector<64x128xi32>
    %12 = tpu.iota {dimensions = array<i32: 1>} : vector<64x128xi32>
    %13 = vector.broadcast %4 : i32 to vector<64x128xi32>
    %14 = arith.addi %13, %12 : vector<64x128xi32>
    %15 = arith.cmpi slt, %14, %11 : vector<64x128xi32>
    %c2_i32 = arith.constant 2 : i32
    %16 = vector.broadcast %c2_i32 : i32 to vector<64x128xi32>
    %17 = arith.cmpi sge, %14, %16 : vector<64x128xi32>
    %18 = arith.andi %15, %17 : vector<64x128xi1>
    %19 = vector.extract_strided_slice %6 {offsets = [0, 0], sizes = [64, 1], strides = [1, 1]} : vector<64x2xi32> to vector<64x1xi32>
    %20 = vector.extract_strided_slice %8 {offsets = [0, 0], sizes = [1, 128], strides = [1, 1]} : vector<2x128xi32> to vector<1x128xi32>
    %21 = vector.broadcast %19 : vector<64x1xi32> to vector<64x128xi32>
    %22 = vector.broadcast %20 : vector<1x128xi32> to vector<64x128xi32>
    %23 = arith.cmpi eq, %21, %22 : vector<64x128xi32>
    %24 = arith.andi %18, %23 : vector<64x128xi1>
    %25 = vector.extract_strided_slice %6 {offsets = [0, 1], sizes = [64, 1], strides = [1, 1]} : vector<64x2xi32> to vector<64x1xi32>
    %26 = vector.extract_strided_slice %8 {offsets = [1, 0], sizes = [1, 128], strides = [1, 1]} : vector<2x128xi32> to vector<1x128xi32>
    %27 = vector.broadcast %25 : vector<64x1xi32> to vector<64x128xi32>
    %28 = vector.broadcast %26 : vector<1x128xi32> to vector<64x128xi32>
    %29 = arith.cmpi eq, %27, %28 : vector<64x128xi32>
    %30 = arith.andi %24, %29 : vector<64x128xi1>
    %31 = arith.extui %30 : vector<64x128xi1> to vector<64x128xi32>
    %32 = arith.sitofp %31 : vector<64x128xi32> to vector<64x128xf32>
    %c0_6 = arith.constant 0 : index
    %c0_7 = arith.constant 0 : index
    %33 = vector.load %arg11[%c0_6, %c0_7] : memref<64x1xf32, #tpu.memory_space<vmem>>, vector<64x1xf32>
    %cst = arith.constant dense<0.000000e+00> : vector<64xf32>
    %34 = vector.multi_reduction <add>, %32, %cst [1] : vector<64x128xf32> to vector<64xf32>
    %35 = vector.shape_cast %34 : vector<64xf32> to vector<64x1xf32>
    %36 = arith.addf %33, %35 : vector<64x1xf32>
    %c0_8 = arith.constant 0 : index
    %c0_9 = arith.constant 0 : index
    %37 = vector.load %arg11[%c0_8, %c0_9] : memref<64x1xf32, #tpu.memory_space<vmem>>, vector<64x1xf32>
    tpu.vector_store %arg11[%c0_8, %c0_9], %36 {strides = array<i32>} : memref<64x1xf32, #tpu.memory_space<vmem>>, vector<64x1xf32>,
    %c0_10 = arith.constant 0 : index
    %c0_11 = arith.constant 0 : index
    %38 = vector.load %arg10[%c0_10, %c0_11] : memref<64x32xf32, #tpu.memory_space<vmem>>, vector<64x32xf32>
    %39 = arith.truncf %32 : vector<64x128xf32> to vector<64x128xbf16>
    %c0_12 = arith.constant 0 : index
    %c0_13 = arith.constant 0 : index
    %c0_14 = arith.constant 0 : index
    %40 = vector.load %arg5[%c0_12, %c0_13, %c0_14] : memref<1x128x32xbf16, #tpu.memory_space<vmem>>, vector<1x128x32xbf16>
    %41 = vector.shape_cast %40 : vector<1x128x32xbf16> to vector<128x32xbf16>
    %cst_15 = arith.constant dense<0.000000e+00> : vector<64x32xf32>
    %42 = tpu.matmul %39, %41, %cst_15 {dimension_numbers = #tpu.dot_dimension_numbers<[1], [0], [0], [1], [0, 0, 1, 1], [], []>} : vector<64x128xbf16>, vector<128x32xbf16>, vector<64x32xf32> -> vector<64x32xf32>
    %43 = arith.addf %38, %42 : vector<64x32xf32>
    %c0_16 = arith.constant 0 : index
    %c0_17 = arith.constant 0 : index
    %44 = vector.load %arg10[%c0_16, %c0_17] : memref<64x32xf32, #tpu.memory_space<vmem>>, vector<64x32xf32>
    tpu.vector_store %arg10[%c0_16, %c0_17], %43 {strides = array<i32>} : memref<64x32xf32, #tpu.memory_space<vmem>>, vector<64x32xf32>,
    %c1_i32 = arith.constant 1 : i32
    %45 = arith.cmpi eq, %arg2, %c1_i32 : i32
    %46 = arith.extui %45 : i1 to i32
    %c0_i32_18 = arith.constant 0 : i32
    %47 = arith.cmpi ne, %46, %c0_i32_18 : i32
    scf.if %47 {
      %c0_19 = arith.constant 0 : index
      %c0_20 = arith.constant 0 : index
      %48 = vector.load %arg11[%c0_19, %c0_20] : memref<64x1xf32, #tpu.memory_space<vmem>>, vector<64x1xf32>
      %cst_21 = arith.constant 1.000000e+00 : f32
      %49 = vector.broadcast %cst_21 : f32 to vector<64x1xf32>
      %50 = arith.maximumf %48, %49 : vector<64x1xf32>
      %cst_22 = arith.constant 1.000000e+00 : f32
      %51 = vector.broadcast %cst_22 : f32 to vector<64x1xf32>
      %52 = arith.divf %51, %50 : vector<64x1xf32>
      %c0_23 = arith.constant 0 : index
      %c0_24 = arith.constant 0 : index
      %53 = vector.load %arg10[%c0_23, %c0_24] : memref<64x32xf32, #tpu.memory_space<vmem>>, vector<64x32xf32>
      %54 = vector.broadcast %52 : vector<64x1xf32> to vector<64x32xf32>
      %55 = arith.mulf %53, %54 : vector<64x32xf32>
      %56 = arith.truncf %55 : vector<64x32xf32> to vector<64x32xbf16>
      %c0_25 = arith.constant 0 : index
      %c0_26 = arith.constant 0 : index
      %c0_27 = arith.constant 0 : index
      %57 = vector.load %arg6[%c0_25, %c0_26, %c0_27] : memref<1x64x32xbf16, #tpu.memory_space<vmem>>, vector<1x64x32xbf16>
      %58 = vector.shape_cast %57 : vector<1x64x32xbf16> to vector<64x32xbf16>
      %c0_28 = arith.constant 0 : index
      %c0_29 = arith.constant 0 : index
      %59 = vector.load %arg7[%c0_28, %c0_29] : memref<64x32xbf16, #tpu.memory_space<vmem>>, vector<32x32xbf16>
      %cst_30 = arith.constant dense<0.000000e+00> : vector<64x32xf32>
      %60 = tpu.matmul %56, %59, %cst_30 {dimension_numbers = #tpu.dot_dimension_numbers<[1], [0], [0], [1], [0, 0, 1, 1], [], []>} : vector<64x32xbf16>, vector<32x32xbf16>, vector<64x32xf32> -> vector<64x32xf32>
      %c32 = arith.constant 32 : index
      %c0_31 = arith.constant 0 : index
      %61 = vector.load %arg7[%c32, %c0_31] : memref<64x32xbf16, #tpu.memory_space<vmem>>, vector<32x32xbf16>
      %cst_32 = arith.constant dense<0.000000e+00> : vector<64x32xf32>
      %62 = tpu.matmul %58, %61, %cst_32 {dimension_numbers = #tpu.dot_dimension_numbers<[1], [0], [0], [1], [0, 0, 1, 1], [], []>} : vector<64x32xbf16>, vector<32x32xbf16>, vector<64x32xf32> -> vector<64x32xf32>
      %63 = arith.addf %60, %62 : vector<64x32xf32>
      %c0_33 = arith.constant 0 : index
      %c0_34 = arith.constant 0 : index
      %64 = vector.load %arg8[%c0_33, %c0_34] : memref<1x32xf32, #tpu.memory_space<vmem>>, vector<1x32xf32>
      %65 = vector.broadcast %64 : vector<1x32xf32> to vector<64x32xf32>
      %66 = arith.addf %63, %65 : vector<64x32xf32>
      %c0_35 = arith.constant 0 : index
      %c0_36 = arith.constant 0 : index
      %c0_37 = arith.constant 0 : index
      %67 = vector.load %arg9[%c0_35, %c0_36, %c0_37] : memref<1x64x32xf32, #tpu.memory_space<vmem>>, vector<1x64x32xf32>
      %68 = vector.shape_cast %67 : vector<1x64x32xf32> to vector<64x32xf32>
      %69 = vector.shape_cast %66 : vector<64x32xf32> to vector<1x64x32xf32>
      tpu.vector_store %arg9[%c0_35, %c0_36, %c0_37], %69 {strides = array<i32>} : memref<1x64x32xf32, #tpu.memory_space<vmem>>, vector<1x64x32xf32>,
    } else {
    }
    return
  }
  func.func @transform_0(%arg0: i32, %arg1: i32, %arg2: i32) -> (i32, i32, i32) {
    %c0_i32 = arith.constant 0 : i32
    %c0_i32_0 = arith.constant 0 : i32
    return %arg0, %arg1, %c0_i32 : i32, i32, i32
  }
  func.func @transform_1(%arg0: i32, %arg1: i32, %arg2: i32) -> (i32, i32, i32) {
    %c0_i32 = arith.constant 0 : i32
    %c0_i32_0 = arith.constant 0 : i32
    return %arg0, %c0_i32, %arg2 : i32, i32, i32
  }
  func.func @transform_2(%arg0: i32, %arg1: i32, %arg2: i32) -> (i32, i32, i32) {
    %c0_i32 = arith.constant 0 : i32
    %c0_i32_0 = arith.constant 0 : i32
    return %arg0, %arg2, %c0_i32 : i32, i32, i32
  }
  func.func @transform_3(%arg0: i32, %arg1: i32, %arg2: i32) -> (i32, i32, i32) {
    %c0_i32 = arith.constant 0 : i32
    %c0_i32_0 = arith.constant 0 : i32
    return %arg0, %arg1, %c0_i32 : i32, i32, i32
  }
  func.func @transform_4(%arg0: i32, %arg1: i32, %arg2: i32) -> (i32, i32) {
    %c0_i32 = arith.constant 0 : i32
    %c0_i32_0 = arith.constant 0 : i32
    %c0_i32_1 = arith.constant 0 : i32
    return %c0_i32, %c0_i32_0 : i32, i32
  }
  func.func @transform_5(%arg0: i32, %arg1: i32, %arg2: i32) -> (i32, i32) {
    %c0_i32 = arith.constant 0 : i32
    %c0_i32_0 = arith.constant 0 : i32
    %c0_i32_1 = arith.constant 0 : i32
    return %c0_i32, %c0_i32_0 : i32, i32
  }
  func.func @transform_6(%arg0: i32, %arg1: i32, %arg2: i32) -> (i32, i32, i32) {
    %c0_i32 = arith.constant 0 : i32
    %c0_i32_0 = arith.constant 0 : i32
    return %arg0, %arg1, %c0_i32 : i32, i32, i32
  }
}

</mosaic_0001>

<bundles_post_ra>
// kernel: tpu_custom_call.1
= control target key start
LH: loop header
LB: loop body
LE: loop exit
PB: predicated region body
PF: predicated region fallthrough
CT: control target
= control target key end

     0   :  { %s1619_s21 = smov 0   ;;  %s1621_s22 = smov 0   ;;  %s1921_s0 = inlined_call_operand.vmem [shape: s32[2,256,2], index: 0, kind: input, shape index: {}]   ;;  %s1922_s1 = inlined_call_operand.vmem [shape: s32[2,2,256], index: 1, kind: input, shape index: {}]   ;;  %s1923_s2 = inlined_call_operand.vmem [shape: bf16[2,256,32], index: 2, kind: input, shape index: {}]   ;;  %s1924_s3 = inlined_call_operand.vmem [shape: bf16[2,256,32], index: 3, kind: input, shape index: {}]   ;;  %s1925_s4 = inlined_call_operand.vmem [shape: bf16[64,32], index: 4, kind: input, shape index: {}]   ;;  %s1926_s5 = inlined_call_operand.vmem [shape: f32[1,32], index: 5, kind: input, shape index: {}]   ;;  %s1927_s6 = inlined_call_operand.vmem [shape: f32[2,256,32], index: 6, kind: output, shape index: {}]  }
   0x1   :  { %1931 = sst [smem:[#allocation9_spill]] %s1921_s0  ;;  %s1623_s23 = smov 0  }
   0x2   :  { %s1625_s24 = smov 0   ;;  %s1627_s25 = smov 0  }
   0x3   :  { %s1629_s26 = smov 0   ;;  %s1631_s27 = smov 0  }
   0x4 LB: > { %1932 = sst [smem:[#allocation4_spill]] %s1568_s25  ;;  %s28_s28 = sadd.s32 1, %s1564_s24  ;;  %s1576_s27 = sphi %s1631_s27, %s16_s27   ;;  %s1572_s26 = sphi %s1629_s26, %s1977_s26   ;;  %s1568_s25 = sphi %s1627_s25, %s1976_s25   ;;  %s1564_s24 = sphi %s1625_s24, %s1979_s24   ;;  %s1560_s23 = sphi %s1623_s23, %s1974_s23   ;;  %s1556_s22 = sphi %s1621_s22, %s1973_s22   ;;  %s1552_s21 = sphi %s1619_s21, %s1978_s21  }
   0x5   : > { %1933 = sst [smem:[#allocation5_spill]] %s1572_s26  ;;  %p29_p0 = scmp.ge.s32.totalorder %s28_s28, 2 }
   0x6   : > { %s31_s29 = sadd.s32 1, %s1568_s25  ;;  %p1264_p1 = scmp.ge.s32.totalorder %s1576_s27, 1 }
   0x7   : > { %p289_p2 = scmp.lt.s32.totalorder %s1576_s27, 17  ;;  %s1981_s28 = smov (%p29_p0, %s28_s28), 0 }
   0x8   : > { %1934 = sst [smem:[#allocation6_spill]] %s1981_s28  ;;  %s1983_s29 = smov (!%p29_p0, %s31_s29), %s1568_s25 }
   0x9   : > { %p290_p3 = pnand %p1264_p1, %p289_p2  ;;  %p33_p4 = scmp.ge.s32.totalorder %s1983_s29, 4 }
   0xa   : > { %s35_s30 = sadd.s32 1, %s1572_s26  ;;  %s1265_s7 = sshll.u32 (!%p290_p3), %s1556_s22, 3 }
   0xb   : > { %s1985_s29 = smov (%p33_p4, %s1983_s29), 0  ;;  %s1987_s30 = smov (!%p33_p4, %s35_s30), %s1572_s26 }
   0xc   : > { %1935 = sst [smem:[#allocation7_spill]] %s1985_s29  ;;  %p37_p5 = scmp.ge.s32.totalorder %s1987_s30, 2 }
   0xd   : > { %293 = sbr.rel (%p290_p3) target bundleno = 723 (0x2d3), region = 44  ;;  %p354_p6 = scmp.lt.s32.totalorder (!%p290_p3), %s1560_s23, 1 }
   0xe   : > { %s1989_s30 = smov (%p37_p5, %s1987_s30), 0  ;;  %p356_p7 = scmp.lt.s32.totalorder (!%p290_p3), %s1265_s7, 31 }
   0xf   : > { %1936 = sst [smem:[#allocation8_spill]] %s1989_s30  ;;  %p365_p8 = scmp.lt.s32.totalorder (!%p290_p3), %s1552_s21, 1 }
  0x10   : > { %s1270_s11 = sshll.u32 (!%p290_p3), %s1552_s21, 4  ;;  %s1937_s0 = sld [smem:[#allocation9_spill]] (!%p290_p3) }
  0x11   : > { %p374_p9 = scmp.lt.s32.totalorder (!%p290_p3), %s1270_s11, 31  ;;  %p1279_p10 = scmp.ne.s32.totalorder (!%p290_p3), %s1552_s21, 0 }
  0x14   : > { %s1991_s23 = smov (!%p354_p6, %s1560_s23), 1  ;;  %s1993_s7 = smov (!%p356_p7, %s1265_s7), 31 }
  0x15   : > { %s1266_s8 = sshll.u32 %s1991_s23, 5  ;;  %s1268_s9 = sshll.u32 %s1991_s23, 1  ;;  %vm406_vm0 = vcmask (!%p1279_p10), 261120   ;;  %vm415_vm1 = vcmask (!%p1279_p10), 7168   ;;  %v1578_v0 = vmov (!%p1279_p10), 0.0  }
  0x16   : > { %s359_s10 = sadd.s32 %s1266_s8, %s1993_s7  ;;  %s1995_s11 = smov (!%p374_p9, %s1270_s11), 31  ;;  %407 = vst.msk [vmem:[#allocation2] sm:$0xff] (!%p1279_p10), %vm406_vm0, %v1578_v0  ;;  %408 = vst.msk [vmem:[#allocation2 + $0x8] sm:$0xff] (!%p1279_p10), %vm406_vm0, %v1578_v0 }
  0x17   : > { %s1267_s12 = sshll.u32 %s359_s10, 3  ;;  %s1275_s16 = sshll.u32 %s359_s10, 2  ;;  %409 = vst.msk [vmem:[#allocation2 + $0x10] sm:$0xff] (!%p1279_p10), %vm406_vm0, %v1578_v0  ;;  %410 = vst.msk [vmem:[#allocation2 + $0x18] sm:$0xff] (!%p1279_p10), %vm406_vm0, %v1578_v0 }
  0x18   : > { %s1671_s15 = scalar_lea.vmem %s1937_s0, %s1267_s12  ;;  %s1677_s30 = scalar_lea.vmem %s1924_s3, %s1275_s16  ;;  %411 = vst.msk [vmem:[#allocation2 + $0x20] sm:$0xff] (!%p1279_p10), %vm406_vm0, %v1578_v0  ;;  %412 = vst.msk [vmem:[#allocation2 + $0x28] sm:$0xff] (!%p1279_p10), %vm406_vm0, %v1578_v0 }
  0x19   : > { %s366_s17 = scalar_select %p365_p8, %s1552_s21, 1 }
  0x1a   : > { %s377_s23 = sadd.s32 %s1266_s8, %s1995_s11  ;;  %405 = sbr.rel (%p1279_p10) target bundleno = 33 (0x21), region = 48  ;;  %413 = vst.msk [vmem:[#allocation2 + $0x30] sm:$0xff] (!%p1279_p10), %vm406_vm0, %v1578_v0  ;;  %414 = vst.msk [vmem:[#allocation2 + $0x38] sm:$0xff] (!%p1279_p10), %vm406_vm0, %v1578_v0 }
  0x1b   : > { %s368_s18 = sadd.s32 %s1268_s9, %s366_s17  ;;  %s1272_s25 = sshll.u32 %s377_s23, 2  ;;  %416 = vst.msk [vmem:[#allocation3] sm:$0xff] (!%p1279_p10), %vm415_vm1, %v1578_v0  ;;  %417 = vst.msk [vmem:[#allocation3 + $0x8] sm:$0xff] (!%p1279_p10), %vm415_vm1, %v1578_v0 }
  0x1c   : > { %s1269_s29 = sshll.u32 %s368_s18, 1  ;;  %s1687_s10 = scalar_lea.vmem %s1923_s2, %s1272_s25  ;;  %418 = vst.msk [vmem:[#allocation3 + $0x10] sm:$0xff] (!%p1279_p10), %vm415_vm1, %v1578_v0  ;;  %419 = vst.msk [vmem:[#allocation3 + $0x18] sm:$0xff] (!%p1279_p10), %vm415_vm1, %v1578_v0 }
  0x1d   : > { %s1682_s26 = scalar_lea.vmem %s1922_s1, %s1269_s29  ;;  %s1692_s17 = scalar_lea.vmem %s1927_s6, %s1267_s12  ;;  %420 = vst.msk [vmem:[#allocation3 + $0x20] sm:$0xff] (!%p1279_p10), %vm415_vm1, %v1578_v0  ;;  %421 = vst.msk [vmem:[#allocation3 + $0x28] sm:$0xff] (!%p1279_p10), %vm415_vm1, %v1578_v0 }
  0x1e   : > { %422 = vst.msk [vmem:[#allocation3 + $0x30] sm:$0xff] (!%p1279_p10), %vm415_vm1, %v1578_v0  ;;  %423 = vst.msk [vmem:[#allocation3 + $0x38] sm:$0xff] (!%p1279_p10), %vm415_vm1, %v1578_v0 }
  0x21 PF: > { %v430_v1 = vld [vmem:[%s1671_s15 + $0x20] sm:$0xff]  ;;  %v1579_v3 = vmov 0   ;;  %v431_v4 = vld [vmem:[%s1671_s15 + $0x28] sm:$0xff]  ;;  %v429_v7 = vld [vmem:[%s1671_s15 + $0x18] sm:$0xff]  ;;  %v1580_v15 = vmov 1   ;;  %v435_v19 = vlaneseq  ;;  %s1280_s0 = sshll.u32 %s1556_s22, 6 }
  0x22   : > { %v426_v2 = vld [vmem:[%s1671_s15] sm:$0xff]  ;;  %1485 = vset.pattern.permute.xlu1 %v1579_v3  ;;  %1484 = vset.pattern.permute.xlu0 %v1579_v3  ;;  %v427_v5 = vld [vmem:[%s1671_s15 + $0x8] sm:$0xff]  ;;  %v428_v9 = vld [vmem:[%s1671_s15 + $0x10] sm:$0xff]  ;;  %s1281_s25 = sshll.u32 %s1552_s21, 7  ;;  %v444_v23 = vstv %s1280_s0  ;;  %v1954_v61 = vmov 0  ;;  %v1956_v62 = vmov 0 }
  0x23   : > { %487 = vperm.xlu1 %1485, %v430_v1   ;;  %475 = vperm.xlu0 %1484, %v426_v2   ;;  %v1488_v6 = vld [vmem:[%s1687_s10] sm:$0xff]   ;;  %v1489_v8 = vld [vmem:[%s1687_s10 + $0x8] sm:$0xff]   ;;  %v1490_v10 = vld [vmem:[%s1687_s10 + $0x10] sm:$0xff]   ;;  %v436_v20 = vshrl.u32 %v435_v19, 7  ;;  %v454_v21 = vand.u32 127, %v435_v19  ;;  %v455_v24 = vstv %s1281_s25  ;;  %v1581_v3 = vmov 0.0  }
  0x24   : > { %1350 = vmatprep.subr.bf16.mxu0 %v1488_v6  ;;  %1398 = vmatprep.subr.bf16.mxu1 %v1488_v6  ;;  %v433_v11 = vld [vmem:[%s1671_s15 + $0x38] sm:$0xff]  ;;  %v432_v12 = vld [vmem:[%s1671_s15 + $0x30] sm:$0xff]  ;;  %v1492_v14 = vld [vmem:[%s1687_s10 + $0x20] sm:$0xff]   ;;  %p1306_p11 = scmp.ne.s32.totalorder %s1552_s21, 1 }
  0x25   : > { %1351 = vmatpush3.bf16.msra.mxu0 %v1488_v6  ;;  %1406 = vmatpush3.bf16.msra.mxu1 %v1488_v6  ;;  %v1491_v13 = vld [vmem:[%s1687_s10 + $0x18] sm:$0xff]   ;;  %v1493_v16 = vld [vmem:[%s1687_s10 + $0x28] sm:$0xff]   ;;  %v1494_v17 = vld [vmem:[%s1687_s10 + $0x30] sm:$0xff]   ;;  %v440_v22 = vadd.s32 32, %v436_v20  ;;  %v441_v25 = vadd.s32 40, %v436_v20  ;;  %v437_v28 = vadd.s32 8, %v436_v20  ;;  %v456_v29 = vadd.s32 %v455_v24, %v454_v21 }
  0x26   : > { %1352 = vmatprep.subr.bf16.mxu0 %v1489_v8  ;;  %1399 = vmatprep.subr.bf16.mxu1 %v1489_v8  ;;  %v1495_v18 = vld [vmem:[%s1687_s10 + $0x38] sm:$0xff]   ;;  %v445_v30 = vadd.s32 %v444_v23, %v436_v20  ;;  %v439_v31 = vadd.s32 24, %v436_v20  ;;  %v438_v33 = vadd.s32 16, %v436_v20  ;;  %v500_v34 = vsub.s32 0, %v436_v20  ;;  %v434_v36 = vld [vmem:[%s1682_s26] sm:$0x3] }
  0x27   : > { %490 = vperm.xlu1 %1485, %v431_v4   ;;  %478 = vperm.xlu0 %1484, %v427_v5   ;;  %v449_v32 = vadd.s32 %v444_v23, %v440_v22  ;;  %v450_v35 = vadd.s32 %v444_v23, %v441_v25  ;;  %v446_v39 = vadd.s32 %v444_v23, %v437_v28  ;;  %v443_v40 = vadd.s32 56, %v436_v20  ;;  %v578_v24 = vld [vmem:[#allocation3] sm:$0xff]  ;;  %v622_v50 = vld [vmem:[#allocation2 + $0x18] sm:$0xff]  ;;  %v620_v53 = vld [vmem:[#allocation2 + $0x8] sm:$0xff] }
  0x28   : > { %vm1930_vm2 = vcmp.ge.s32.totalorder %v456_v29, 2  ;;  %vm457_vm3 = vcmp.lt.s32.totalorder %v456_v29, %v445_v30  ;;  %v448_v41 = vadd.s32 %v444_v23, %v439_v31  ;;  %v447_v42 = vadd.s32 %v444_v23, %v438_v33  ;;  %v580_v30 = vld [vmem:[#allocation3 + $0x10] sm:$0xff] }
  0x29   : > { %1353 = vmatpush3.bf16.msra.mxu0 %v1489_v8  ;;  %1407 = vmatpush3.bf16.msra.mxu1 %v1489_v8  ;;  %vm461_vm4 = vcmp.lt.s32.totalorder %v456_v29, %v449_v32  ;;  %v1722_v43 = vrot.slane %v434_v36, %v500_v34  ;;  %vm462_vm5 = vcmp.lt.s32.totalorder %v456_v29, %v450_v35  ;;  %vm1725_vm6 = vmand %vm457_vm3, %vm1930_vm2  ;;  %v442_v48 = vadd.s32 48, %v436_v20  ;;  %v583_v35 = vld [vmem:[#allocation3 + $0x28] sm:$0xff] }
  0x2a   : > { %1354 = vmatprep.subr.bf16.mxu0 %v1490_v10  ;;  %1400 = vmatprep.subr.bf16.mxu1 %v1490_v10  ;;  %vm458_vm7 = vcmp.lt.s32.totalorder %v456_v29, %v446_v39  ;;  %v452_v47 = vadd.s32 %v444_v23, %v443_v40  ;;  %vm1730_vm8 = vmand %vm461_vm4, %vm1930_vm2  ;;  %vm460_vm9 = vcmp.lt.s32.totalorder %v456_v29, %v448_v41  ;;  %v544_v51 = vsub.s32 1, %v436_v20  ;;  %v585_v41 = vld [vmem:[#allocation3 + $0x38] sm:$0xff] }
  0x2b   : > { %484 = vperm.xlu1 %1485, %v429_v7   ;;  %481 = vperm.xlu0 %1484, %v428_v9   ;;  %vm1735_vm10 = vmand %vm462_vm5, %vm1930_vm2  ;;  %vm459_vm11 = vcmp.lt.s32.totalorder %v456_v29, %v447_v42  ;;  %v451_v56 = vadd.s32 %v444_v23, %v442_v48  ;;  %v579_v23 = vld [vmem:[#allocation3 + $0x8] sm:$0xff]  ;;  %v584_v42 = vld [vmem:[#allocation3 + $0x30] sm:$0xff] }
  0x2c   : > { %vm1741_vm13 = vmand %vm458_vm7, %vm1930_vm2  ;;  %vm464_vm0 = vcmp.lt.s32.totalorder %v456_v29, %v452_v47  ;;  %v545_v59 = vrot.slane %v434_v36, %v544_v51  ;;  %v582_v36 = vld [vmem:[#allocation3 + $0x20] sm:$0xff]  ;;  %v621_v47 = vld [vmem:[#allocation2 + $0x10] sm:$0xff] }
  0x2d   : > { %1355 = vmatpush3.bf16.msra.mxu0 %v1490_v10  ;;  %1408 = vmatpush3.bf16.msra.mxu1 %v1490_v10  ;;  %vm1747_vm15 = vmand %vm460_vm9, %vm1930_vm2  ;;  %v619_v48 = vld [vmem:[#allocation2] sm:$0xff]  ;;  %v1583_v10 = vmov (!%p1306_p11), 0  }
  0x2e   : > { %1356 = vmatprep.subr.bf16.mxu0 %v1491_v13  ;;  %1401 = vmatprep.subr.bf16.mxu1 %v1491_v13  ;;  %vm1753_vm3 = vmand %vm459_vm11, %vm1930_vm2 }
  0x2f   : > { %496 = vperm.xlu1 %1485, %v433_v11   ;;  %493 = vperm.xlu0 %1484, %v432_v12   ;;  %vm1772_vm11 = vmand %vm464_vm0, %vm1930_vm2 }
  0x30   : > { %v1955_v61 = vsel %vm1772_vm11, 4294967295, %v1954_v61 }
  0x31   : > { %1357 = vmatpush3.bf16.msra.mxu0 %v1491_v13  ;;  %1409 = vmatpush3.bf16.msra.mxu1 %v1491_v13 }
  0x32   : > { %1358 = vmatprep.subr.bf16.mxu0 %v1492_v14  ;;  %1402 = vmatprep.subr.bf16.mxu1 %v1492_v14 }
  0x33   : > { %1487 = vset.pattern.permute.xlu1 %v1580_v15  ;;  %1486 = vset.pattern.permute.xlu0 %v1580_v15 }
  0x34   : > { %522 = vperm.xlu1 %1487, %v427_v5   ;;  %519 = vperm.xlu0 %1486, %v426_v2  }
  0x35   : > { %1359 = vmatpush3.bf16.msra.mxu0 %v1492_v14  ;;  %1410 = vmatpush3.bf16.msra.mxu1 %v1492_v14 }
  0x36   : > { %1360 = vmatprep.subr.bf16.mxu0 %v1493_v16  ;;  %1403 = vmatprep.subr.bf16.mxu1 %v1493_v16 }
  0x38   : > { %531 = vperm.xlu1 %1487, %v430_v1   ;;  %534 = vperm.xlu0 %1486, %v431_v4   ;;  %v624_v1 = vld [vmem:[#allocation2 + $0x28] sm:$0xff] }
  0x39   : > { %1361 = vmatpush3.bf16.msra.mxu0 %v1493_v16  ;;  %1411 = vmatpush3.bf16.msra.mxu1 %v1493_v16 }
  0x3a   : > { %1362 = vmatprep.subr.bf16.mxu0 %v1494_v17  ;;  %1404 = vmatprep.subr.bf16.mxu1 %v1494_v17 }
  0x3c   : > { %525 = vperm.xlu1 %1487, %v428_v9   ;;  %528 = vperm.xlu0 %1486, %v429_v7   ;;  %v1582_v9 = vmov 1.0|1.0  }
  0x3d   : > { %1363 = vmatpush3.bf16.msra.mxu0 %v1494_v17  ;;  %1412 = vmatpush3.bf16.msra.mxu1 %v1494_v17 }
  0x3e   : > { %1364 = vmatprep.subr.bf16.mxu0 %v1495_v18  ;;  %1405 = vmatprep.subr.bf16.mxu1 %v1495_v18 }
  0x40   : > { %537 = vperm.xlu1 %1487, %v432_v12   ;;  %540 = vperm.xlu0 %1486, %v433_v11  }
  0x41   : > { %1365 = vmatpush3.bf16.msra.mxu0 %v1495_v18  ;;  %1413 = vmatpush3.bf16.msra.mxu1 %v1495_v18 }
  0x44   : > { %1497 = vset.pattern.permute.xlu1 (!%p1306_p11), %v1583_v10  ;;  %1496 = vset.pattern.permute.xlu0 (!%p1306_p11), %v1583_v10 }
  0xa2   : > { %v488_v26 = vpop.permute.xlu1 %487  ;;  %v476_v27 = vpop.permute.xlu0 %475 }
  0xa3   : > { %vm506_vm12 = vcmp.eq.s32.totalorder %v488_v26, %v1722_v43  ;;  %vm502_vm14 = vcmp.eq.s32.totalorder %v476_v27, %v1722_v43 }
  0xa4   : > { %vm1759_vm4 = vmand %vm1730_vm8, %vm506_vm12  ;;  %vm463_vm12 = vcmp.lt.s32.totalorder %v456_v29, %v451_v56  ;;  %v625_v56 = vld [vmem:[#allocation2 + $0x30] sm:$0xff] }
  0xa5   : > { %vm1766_vm7 = vmand %vm1725_vm6, %vm502_vm14 }
  0xa6   : > { %v491_v37 = vpop.permute.xlu1 %490  ;;  %v479_v38 = vpop.permute.xlu0 %478 }
  0xa7   : > { %vm507_vm1 = vcmp.eq.s32.totalorder %v491_v37, %v1722_v43  ;;  %vm503_vm5 = vcmp.eq.s32.totalorder %v479_v38, %v1722_v43 }
  0xa8   : > { %vm1778_vm8 = vmand %vm1735_vm10, %vm507_vm1  ;;  %vm1960_vm10 = vcmp.ge.s32.totalorder %v456_v29, 2  ;;  %v581_v29 = vld [vmem:[#allocation3 + $0x18] sm:$0xff] }
  0xa9   : > { %v1957_v62 = vsel %vm1778_vm8, 4294967295, %v1956_v62  ;;  %vm511_vm6 = vmand %vm1741_vm13, %vm503_vm5 }
  0xaa   : > { %v485_v45 = vpop.permute.xlu1 %484  ;;  %v482_v46 = vpop.permute.xlu0 %481  ;;  %vm1792_vm1 = vmand %vm463_vm12, %vm1960_vm10 }
  0xab   : > { %vm505_vm9 = vcmp.eq.s32.totalorder %v485_v45, %v1722_v43  ;;  %vm504_vm11 = vcmp.eq.s32.totalorder %v482_v46, %v1722_v43 }
  0xac   : > { %vm1786_vm14 = vmand %vm1747_vm15, %vm505_vm9 }
  0xad   : > { %vm1800_vm5 = vmand %vm1753_vm3, %vm504_vm11  ;;  %vm1970_vm11 = vnez %v1955_v61 }
  0xae   : > { %v497_v54 = vpop.permute.xlu1 %496  ;;  %v494_v55 = vpop.permute.xlu0 %493 }
  0xb3   : > { %v523_v63 = vpop.permute.xlu1 %522  ;;  %v520_v0 = vpop.permute.xlu0 %519 }
  0xb4   : > { %vm547_vm0 = vcmp.eq.s32.totalorder %v523_v63, %v545_v59  ;;  %vm546_vm2 = vcmp.eq.s32.totalorder %v520_v0, %v545_v59 }
  0xb5   : > { %vm555_vm8 = vmand %vm511_vm6, %vm547_vm0  ;;  %vm509_vm6 = vcmp.eq.s32.totalorder %v497_v54, %v1722_v43 }
  0xb6   : > { %v1283_v4 = vsel %vm555_vm8, 1.0, %v1581_v3  ;;  %vm554_vm13 = vmand %vm1766_vm7, %vm546_vm2  ;;  %vm1967_vm7 = vnez %v1957_v62  ;;  %v626_v62 = vld [vmem:[#allocation2 + $0x38] sm:$0xff] }
  0xb7   : > { %v532_v5 = vpop.permute.xlu1 %531  ;;  %v535_v6 = vpop.permute.xlu0 %534  ;;  %588 = vadd.xlane.f32.xlu0 %v1283_v4  ;;  %vm1298_vm15 = vmpackc.low %vm555_vm8, %vm554_vm13  ;;  %v1282_v7 = vsel %vm554_vm13, 1.0, %v1581_v3  ;;  %vm508_vm13 = vcmp.eq.s32.totalorder %v494_v55, %v1722_v43 }
  0xb8   : > { %vm550_vm9 = vcmp.eq.s32.totalorder %v532_v5, %v545_v59  ;;  %vm551_vm12 = vcmp.eq.s32.totalorder %v535_v6, %v545_v59  ;;  %1366 = vmatprep.mubr.msk.bf16.mxu0 %vm1298_vm15, %v1582_v9  ;;  %586 = vadd.xlane.f32.xlu1 %v1282_v7  ;;  %vm1823_vm0 = vmand %vm1970_vm11, %vm509_vm6 }
  0xb9   : > { %vm1807_vm2 = vmand %vm1759_vm4, %vm550_vm9 }
  0xba   : > { %vm1813_vm8 = vmand %vm1967_vm7, %vm551_vm12  ;;  %v1286_v20 = vsel %vm1807_vm2, 1.0, %v1581_v3 }
  0xbb   : > { %v526_v12 = vpop.permute.xlu1 %525  ;;  %v529_v13 = vpop.permute.xlu0 %528  ;;  %vm1302_vm3 = vmpackc.low %vm1813_vm8, %vm1807_vm2  ;;  %v1287_v19 = vsel %vm1813_vm8, 1.0, %v1581_v3  ;;  %vm768_vm2 = vcmask 261120  }
  0xbc   : > { %vm548_vm4 = vcmp.eq.s32.totalorder %v526_v12, %v545_v59  ;;  %vm549_vm10 = vcmp.eq.s32.totalorder %v529_v13, %v545_v59  ;;  %1370 = vmatprep.mubr.msk.bf16.mxu1 %vm1302_vm3, %v1582_v9  ;;  %vm516_vm6 = vmand %vm1792_vm1, %vm508_vm13  ;;  %vm610_vm1 = vcmask 7168  }
  0xbd   : > { %vm557_vm15 = vmand %vm1786_vm14, %vm549_vm10 }
  0xbe   : > { %vm556_vm9 = vmand %vm1800_vm5, %vm548_vm4  ;;  %v1285_v15 = vsel %vm557_vm15, 1.0, %v1581_v3 }
  0xbf   : > { %v538_v16 = vpop.permute.xlu1 %537  ;;  %v541_v17 = vpop.permute.xlu0 %540  ;;  %v1284_v18 = vsel %vm556_vm9, 1.0, %v1581_v3  ;;  %vm1300_vm12 = vmpackc.low %vm557_vm15, %vm556_vm9  ;;  %592 = vadd.xlane.f32.xlu1 %v1285_v15 }
  0xc0   : > { %vm552_vm7 = vcmp.eq.s32.totalorder %v538_v16, %v545_v59  ;;  %vm553_vm11 = vcmp.eq.s32.totalorder %v541_v17, %v545_v59  ;;  %590 = vadd.xlane.f32.xlu0 %v1284_v18  ;;  %1367 = vmatmul.mubr.msk.bf16.vlgmr.msra.gmra.mrb[0].mxu0 %vm1300_vm12, %v1582_v9  ;;  %v623_v59 = vld [vmem:[#allocation2 + $0x20] sm:$0xff]  ;;  %v1498_v18 = vld [vmem:[%s1925_s4 + $0x10] sm:$0xff] (!%p1306_p11)  }
  0xc1   : > { %vm560_vm3 = vmand %vm516_vm6, %vm552_vm7  ;;  %1374 = vmatprep.subr.bf16.mxu1 (!%p1306_p11), %v1498_v18 }
  0xc2   : > { %vm561_vm14 = vmand %vm1823_vm0, %vm553_vm11  ;;  %v1288_v22 = vsel %vm560_vm3, 1.0, %v1581_v3 }
  0xc3   : > { %vm1304_vm5 = vmpackc.low %vm561_vm14, %vm560_vm3  ;;  %596 = vadd.xlane.f32.xlu1 %v1287_v19  ;;  %v1289_v21 = vsel %vm561_vm14, 1.0, %v1581_v3 }
  0xc4   : > { %1371 = vmatmul.mubr.msk.bf16.vlgmr.msra.gmra.mrb[0].mxu1 %vm1304_vm5, %v1582_v9  ;;  %594 = vadd.xlane.f32.xlu0 %v1286_v20 }
  0xc5   : > { %1375 = vmatpush3.bf16.msra.mxu1 (!%p1306_p11), %v1498_v18 }
  0xc7   : > { %600 = vadd.xlane.f32.xlu1 %v1289_v21 }
  0xc8   : > { %598 = vadd.xlane.f32.xlu0 %v1288_v22 }
 0x144   : > { %v589_v25 = vpop.xlane.xlu0 %588 }
 0x145   : > { %v603_v26 = vadd.f32 %v589_v25, %v579_v23  ;;  %v587_v27 = vpop.xlane.xlu1 %586 }
 0x146   : > { %v602_v28 = vadd.f32 %v587_v27, %v578_v24  ;;  %v1499_v27 = vld [vmem:[%s1925_s4] sm:$0xff] (!%p1306_p11)  }
 0x147   : > { %612 = vst.msk [vmem:[#allocation3 + $0x8] sm:$0xff] %vm610_vm1, %v603_v26  ;;  %1386 = vmatprep.subr.bf16.mxu0 (!%p1306_p11), %v1499_v27 }
 0x148   : > { %611 = vst.msk [vmem:[#allocation3] sm:$0xff] %vm610_vm1, %v602_v28  ;;  %1387 = vmatpush3.bf16.msra.mxu0 (!%p1306_p11), %v1499_v27 }
 0x14c   : > { %v593_v31 = vpop.xlane.xlu1 %592 }
 0x14d   : > { %v591_v32 = vpop.xlane.xlu0 %590  ;;  %v605_v33 = vadd.f32 %v593_v31, %v581_v29  ;;  %v1500_v29 = vld [vmem:[%s1925_s4 + $0x18] sm:$0xff] (!%p1306_p11)   ;;  %v1501_v31 = vld [vmem:[%s1677_s30] sm:$0xff] (!%p1306_p11)  }
 0x14e   : > { %v604_v34 = vadd.f32 %v591_v32, %v580_v30  ;;  %v782_v14 = vld [vmem:[#allocation3 + $0x8] sm:$0xff] (!%p1306_p11)  ;;  %1376 = vmatprep.subr.bf16.mxu1 (!%p1306_p11), %v1500_v29  ;;  %1378 = vmatprep.mubr.msk.bf16.mxu1 (!%p1306_p11), %vm768_vm2, %v1501_v31 }
 0x14f   : > { %614 = vst.msk [vmem:[#allocation3 + $0x18] sm:$0xff] %vm610_vm1, %v605_v33  ;;  %v781_v8 = vld [vmem:[#allocation3] sm:$0xff] (!%p1306_p11)  ;;  %v790_v17 = vmax.f32 (!%p1306_p11), %v782_v14, 1.0  ;;  %1377 = vmatpush3.bf16.msra.mxu1 (!%p1306_p11), %v1500_v29  ;;  %v1502_v32 = vld [vmem:[%s1925_s4 + $0x8] sm:$0xff] (!%p1306_p11)  }
 0x150   : > { %613 = vst.msk [vmem:[#allocation3 + $0x10] sm:$0xff] %vm610_vm1, %v604_v34  ;;  %v597_v37 = vpop.xlane.xlu1 %596  ;;  %v789_v12 = vmax.f32 (!%p1306_p11), %v781_v8, 1.0  ;;  %v1503_v34 = vld [vmem:[%s1677_s30 + $0x8] sm:$0xff] (!%p1306_p11)   ;;  %1388 = vmatprep.subr.bf16.mxu0 (!%p1306_p11), %v1502_v32 }
 0x151   : > { %v595_v38 = vpop.xlane.xlu0 %594  ;;  %v607_v39 = vadd.f32 %v597_v37, %v583_v35  ;;  %1389 = vmatpush3.bf16.msra.mxu0 (!%p1306_p11), %v1502_v32 }
 0x152   : > { %v606_v40 = vadd.f32 %v595_v38, %v582_v36  ;;  %v1504_v38 = vld [vmem:[%s1677_s30 + $0x10] sm:$0xff] (!%p1306_p11)  }
 0x153   : > { %616 = vst.msk [vmem:[#allocation3 + $0x28] sm:$0xff] %vm610_vm1, %v607_v39  ;;  %v1505_v39 = vld [vmem:[%s1677_s30 + $0x18] sm:$0xff] (!%p1306_p11)  }
 0x154   : > { %615 = vst.msk [vmem:[#allocation3 + $0x20] sm:$0xff] %vm610_vm1, %v606_v40  ;;  %v601_v43 = vpop.xlane.xlu1 %600 }
 0x155   : > { %v599_v44 = vpop.xlane.xlu0 %598  ;;  %v609_v45 = vadd.f32 %v601_v43, %v585_v41 }
 0x156   : > { %v608_v46 = vadd.f32 %v599_v44, %v584_v42  ;;  %v784_v9 = vld [vmem:[#allocation3 + $0x18] sm:$0xff] (!%p1306_p11) }
 0x157   : > { %618 = vst.msk [vmem:[#allocation3 + $0x38] sm:$0xff] %vm610_vm1, %v609_v45  ;;  %v783_v7 = vld [vmem:[#allocation3 + $0x10] sm:$0xff] (!%p1306_p11)  ;;  %v792_v13 = vmax.f32 (!%p1306_p11), %v784_v9, 1.0 }
 0x158   : > { %617 = vst.msk [vmem:[#allocation3 + $0x30] sm:$0xff] %vm610_vm1, %v608_v46  ;;  %v791_v11 = vmax.f32 (!%p1306_p11), %v783_v7, 1.0 }
 0x15a   : > { %v786_v15 = vld [vmem:[#allocation3 + $0x28] sm:$0xff] (!%p1306_p11)  ;;  %1506 = vrcp.f32 (!%p1306_p11), %v791_v11 }
 0x15b   : > { %v785_v16 = vld [vmem:[#allocation3 + $0x20] sm:$0xff] (!%p1306_p11)  ;;  %v794_v19 = vmax.f32 (!%p1306_p11), %v786_v15, 1.0  ;;  %1508 = vrcp.f32 (!%p1306_p11), %v789_v12 }
 0x15c   : > { %v793_v20 = vmax.f32 (!%p1306_p11), %v785_v16, 1.0  ;;  %1510 = vrcp.f32 (!%p1306_p11), %v792_v13  ;;  %v1323_v13 = vld [vmem:[%s1926_s5] ss:$0 sm:$0xff] (!%p1306_p11) }
 0x15d   : > { %1512 = vrcp.f32 (!%p1306_p11), %v790_v17 }
 0x15e   : > { %v788_v21 = vld [vmem:[#allocation3 + $0x38] sm:$0xff] (!%p1306_p11)  ;;  %1514 = vrcp.f32 (!%p1306_p11), %v794_v19 }
 0x15f   : > { %v787_v22 = vld [vmem:[#allocation3 + $0x30] sm:$0xff] (!%p1306_p11)  ;;  %v796_v23 = vmax.f32 (!%p1306_p11), %v788_v21, 1.0  ;;  %1516 = vrcp.f32 (!%p1306_p11), %v793_v20 }
 0x160   : > { %v795_v24 = vmax.f32 (!%p1306_p11), %v787_v22, 1.0 }
 0x161   : > { %1518 = vrcp.f32 (!%p1306_p11), %v796_v23 }
 0x162   : > { %1520 = vrcp.f32 (!%p1306_p11), %v795_v24 }
 0x164   : > { %v1507_v25 = vpop.eup (!%p1306_p11), %1506 }
 0x165   : > { %v1509_v26 = vpop.eup (!%p1306_p11), %1508  ;;  %833 = vperm.xlu1 (!%p1306_p11), %1497, %v1507_v25  }
 0x166   : > { %v1511_v28 = vpop.eup (!%p1306_p11), %1510  ;;  %823 = vperm.xlu0 (!%p1306_p11), %1496, %v1509_v26  }
 0x167   : > { %v1513_v30 = vpop.eup (!%p1306_p11), %1512 }
 0x168   : > { %v1515_v33 = vpop.eup (!%p1306_p11), %1514 }
 0x169   : > { %838 = vperm.xlu1 (!%p1306_p11), %1497, %v1511_v28   ;;  %v1517_v35 = vpop.eup (!%p1306_p11), %1516 }
 0x16a   : > { %828 = vperm.xlu0 (!%p1306_p11), %1496, %v1513_v30  }
 0x16b   : > { %v1519_v36 = vpop.eup (!%p1306_p11), %1518 }
 0x16c   : > { %v1521_v37 = vpop.eup (!%p1306_p11), %1520 }
 0x16d   : > { %848 = vperm.xlu1 (!%p1306_p11), %1497, %v1515_v33  }
 0x16e   : > { %843 = vperm.xlu0 (!%p1306_p11), %1496, %v1517_v35  }
 0x171   : > { %858 = vperm.xlu1 (!%p1306_p11), %1497, %v1519_v36  }
 0x172   : > { %853 = vperm.xlu0 (!%p1306_p11), %1496, %v1521_v37  }
 0x193   : > { %v1368_v49 = vpop.f32.mrb[0].mxu0 }
 0x194   : > { %v762_v51 = vadd.f32 %v1368_v49, %v621_v47  ;;  %v729_v52 = vpop.f32.mrb[1].mxu0 }
 0x195   : > { %v760_v54 = vadd.f32 %v729_v52, %v619_v48  ;;  %v1369_v55 = vpop.f32.mrb[2].mxu0 }
 0x196   : > { %771 = vst.msk [vmem:[#allocation2 + $0x10] sm:$0xff] %vm768_vm2, %v762_v51  ;;  %v763_v57 = vadd.f32 %v1369_v55, %v622_v50  ;;  %v732_v58 = vpop.f32.mrb[3].mxu0 }
 0x197   : > { %769 = vst.msk [vmem:[#allocation2] sm:$0xff] %vm768_vm2, %v760_v54  ;;  %v761_v60 = vadd.f32 %v732_v58, %v620_v53  ;;  %v1372_v61 = vpop.f32.mrb[0].mxu1  ;;  %780 = sbr.rel (%p1306_p11) target bundleno = 723 (0x2d3), region = 52 }
 0x198   : > { %772 = vst.msk [vmem:[#allocation2 + $0x18] sm:$0xff] %vm768_vm2, %v763_v57  ;;  %v766_v63 = vadd.f32 %v1372_v61, %v625_v56  ;;  %v745_v0 = vpop.f32.mrb[1].mxu1 }
 0x199   : > { %770 = vst.msk [vmem:[#allocation2 + $0x8] sm:$0xff] %vm768_vm2, %v761_v60  ;;  %v764_v2 = vadd.f32 %v745_v0, %v623_v59  ;;  %v1373_v3 = vpop.f32.mrb[2].mxu1 }
 0x19a   : > { %775 = vst.msk [vmem:[#allocation2 + $0x30] sm:$0xff] %vm768_vm2, %v766_v63  ;;  %v767_v4 = vadd.f32 %v1373_v3, %v626_v62  ;;  %v748_v5 = vpop.f32.mrb[3].mxu1  ;;  %1379 = vmatmul.mubr.msk.bf16.vlgmr.msra.gmra.mrb[0].mxu1 (!%p1306_p11), %vm768_vm2, %v1503_v34 }
 0x19b   : > { %773 = vst.msk [vmem:[#allocation2 + $0x20] sm:$0xff] %vm768_vm2, %v764_v2  ;;  %v765_v6 = vadd.f32 %v748_v5, %v624_v1  ;;  %1382 = vmatprep.mubr.msk.bf16.mxu1 (!%p1306_p11), %vm768_vm2, %v1504_v38 }
 0x19c   : > { %776 = vst.msk [vmem:[#allocation2 + $0x38] sm:$0xff] %vm768_vm2, %v767_v4 }
 0x19d   : > { %774 = vst.msk [vmem:[#allocation2 + $0x28] sm:$0xff] %vm768_vm2, %v765_v6  ;;  %v815_v42 = vld [vmem:[#allocation2 + $0x10] sm:$0xff] (!%p1306_p11) }
 0x19e   : > { %v813_v44 = vld [vmem:[#allocation2] sm:$0xff] }
 0x19f   : > { %v816_v43 = vld [vmem:[#allocation2 + $0x18] sm:$0xff] }
 0x1a0   : > { %v814_v45 = vld [vmem:[#allocation2 + $0x8] sm:$0xff] }
 0x1a1   : > { %v819_v61 = vld [vmem:[#allocation2 + $0x30] sm:$0xff] }
 0x1a2   : > { %1383 = vmatmul.mubr.msk.bf16.gmra.mrb[4].mxu1 %vm768_vm2, %v1505_v39  ;;  %v817_v54 = vld [vmem:[#allocation2 + $0x20] sm:$0xff] }
 0x1a3   : > { %v820_v60 = vld [vmem:[#allocation2 + $0x38] sm:$0xff] }
 0x1a4   : > { %v818_v52 = vld [vmem:[#allocation2 + $0x28] sm:$0xff] }
 0x1e4   : > { %v834_v40 = vpop.permute.xlu1 %833 }
 0x1e5   : > { %v824_v41 = vpop.permute.xlu0 %823  ;;  %v863_v47 = vmul.f32 %v834_v40, %v815_v42 }
 0x1e6   : > { %v861_v50 = vmul.f32 %v824_v41, %v813_v44 }
 0x1e8   : > { %v839_v46 = vpop.permute.xlu1 %838 }
 0x1e9   : > { %v864_v48 = vmul.f32 %v839_v46, %v816_v43  ;;  %v829_v49 = vpop.permute.xlu0 %828 }
 0x1ea   : > { %v862_v51 = vmul.f32 %v829_v49, %v814_v45 }
 0x1eb   : > { %v870_v53 = vpack.c.bf16 %v864_v48, %v863_v47 }
 0x1ec   : > { %v849_v55 = vpop.permute.xlu1 %848  ;;  %v869_v56 = vpack.c.bf16 %v862_v51, %v861_v50 }
 0x1ed   : > { %v866_v57 = vmul.f32 %v849_v55, %v818_v52  ;;  %v844_v58 = vpop.permute.xlu0 %843 }
 0x1ee   : > { %v865_v59 = vmul.f32 %v844_v58, %v817_v54  ;;  %1390 = vmatprep.mubr.msk.bf16.mxu0 %vm768_vm2, %v869_v56 }
 0x1ef   : > { %1391 = vmatmul.mubr.msk.bf16.vlgmr.msra.gmra.mrb[0].mxu0 %vm768_vm2, %v870_v53 }
 0x1f0   : > { %v871_v62 = vpack.c.bf16 %v866_v57, %v865_v59  ;;  %v859_v63 = vpop.permute.xlu1 %858 }
 0x1f1   : > { %v868_v0 = vmul.f32 %v859_v63, %v820_v60  ;;  %v854_v1 = vpop.permute.xlu0 %853 }
 0x1f2   : > { %v867_v2 = vmul.f32 %v854_v1, %v819_v61  ;;  %1394 = vmatprep.mubr.msk.bf16.mxu0 %vm768_vm2, %v871_v62 }
 0x1f4   : > { %v872_v3 = vpack.c.bf16 %v868_v0, %v867_v2 }
 0x1f7   : > { %1395 = vmatmul.mubr.msk.bf16.gmra.mrb[4].mxu0 %vm768_vm2, %v872_v3 }
 0x26d   : > { %v1380_v4 = vpop.f32.mrb[0].mxu1 }
 0x26e   : > { %v967_v5 = vpop.f32.mrb[1].mxu1 }
 0x26f   : > { %v1381_v6 = vpop.f32.mrb[2].mxu1 }
 0x270   : > { %v970_v7 = vpop.f32.mrb[3].mxu1 }
 0x275   : > { %v1384_v8 = vpop.f32.mrb[4].mxu1 }
 0x276   : > { %v983_v9 = vpop.f32.mrb[5].mxu1 }
 0x277   : > { %v1385_v10 = vpop.f32.mrb[6].mxu1 }
 0x278   : > { %v986_v11 = vpop.f32.mrb[7].mxu1 }
 0x2c2   : > { %v1392_v12 = vpop.f32.mrb[0].mxu0 }
 0x2c3   : > { %v1065_v14 = vadd.f32 %v1392_v12, %v1380_v4  ;;  %v1056_v15 = vpop.f32.mrb[1].mxu0 }
 0x2c4   : > { %v1057_v16 = vadd.f32 %v1056_v15, %v967_v5  ;;  %v1393_v17 = vpop.f32.mrb[2].mxu0 }
 0x2c5   : > { %v1096_v18 = vadd.f32 %v1323_v13, %v1065_v14  ;;  %v1068_v19 = vadd.f32 %v1393_v17, %v1381_v6  ;;  %v1059_v20 = vpop.f32.mrb[3].mxu0 }
 0x2c6   : > { %v1094_v21 = vadd.f32 %v1323_v13, %v1057_v16  ;;  %v1060_v22 = vadd.f32 %v1059_v20, %v970_v7 }
 0x2c7   : > { %1104 = vst.msk [vmem:[%s1692_s17 + $0x10] sm:$0xff] %vm768_vm2, %v1096_v18  ;;  %v1097_v23 = vadd.f32 %v1323_v13, %v1068_v19 }
 0x2c8   : > { %1102 = vst.msk [vmem:[%s1692_s17] sm:$0xff] %vm768_vm2, %v1094_v21  ;;  %v1095_v24 = vadd.f32 %v1323_v13, %v1060_v22 }
 0x2c9   : > { %1105 = vst.msk [vmem:[%s1692_s17 + $0x18] sm:$0xff] %vm768_vm2, %v1097_v23 }
 0x2ca   : > { %1103 = vst.msk [vmem:[%s1692_s17 + $0x8] sm:$0xff] %vm768_vm2, %v1095_v24  ;;  %v1396_v25 = vpop.f32.mrb[4].mxu0 }
 0x2cb   : > { %v1081_v26 = vadd.f32 %v1396_v25, %v1384_v8  ;;  %v1072_v27 = vpop.f32.mrb[5].mxu0 }
 0x2cc   : > { %v1073_v28 = vadd.f32 %v1072_v27, %v983_v9  ;;  %v1397_v29 = vpop.f32.mrb[6].mxu0 }
 0x2cd   : > { %v1100_v30 = vadd.f32 %v1323_v13, %v1081_v26  ;;  %v1084_v31 = vadd.f32 %v1397_v29, %v1385_v10  ;;  %v1075_v32 = vpop.f32.mrb[7].mxu0 }
 0x2ce   : > { %v1098_v33 = vadd.f32 %v1323_v13, %v1073_v28  ;;  %v1076_v34 = vadd.f32 %v1075_v32, %v986_v11 }
 0x2cf   : > { %1108 = vst.msk [vmem:[%s1692_s17 + $0x30] sm:$0xff] %vm768_vm2, %v1100_v30  ;;  %v1101_v35 = vadd.f32 %v1323_v13, %v1084_v31 }
 0x2d0   : > { %1106 = vst.msk [vmem:[%s1692_s17 + $0x20] sm:$0xff] %vm768_vm2, %v1098_v33  ;;  %v1099_v36 = vadd.f32 %v1323_v13, %v1076_v34 }
 0x2d1   : > { %1109 = vst.msk [vmem:[%s1692_s17 + $0x38] sm:$0xff] %vm768_vm2, %v1101_v35 }
 0x2d2   : > { %1107 = vst.msk [vmem:[%s1692_s17 + $0x28] sm:$0xff] %vm768_vm2, %v1099_v36 }
 0x2d3 PF: > { %s16_s27 = sadd.s32 1, %s1576_s27   ;;  %s1973_s22 = sld [smem:[#allocation4_spill]] }
 0x2d4   : > { %p13_p12 = scmp.ge.s32.totalorder %s16_s27, 18   ;;  %s1974_s23 = sld [smem:[#allocation5_spill]] }
 0x2d5   : > { %s1975_s16 = sld [smem:[#allocation6_spill]]  ;;  %s1976_s25 = sld [smem:[#allocation7_spill]] }
 0x2d6   : > { %s1977_s26 = sld [smem:[#allocation8_spill]]  ;;  %s1978_s21 = smov %s1564_s24 }
 0x2d7   :  { %15 = sbr.rel (!%p13_p12) target bundleno = 4 (0x4), region = 91 }
 0x2db   : > { %s1979_s24 = smov %s1975_s16 }

</bundles_post_ra>
